<compile_context>
chip_gen: v6e
topology: v6e:2x2x1
jax: 0.10.0
libtpu: 0.0.40
codegen_flags: <defaults>
</compile_context>

<pallas_src>
import functools

import numpy as np
import jax
import jax.numpy as jnp
from jax.experimental import pallas as pl
from jax.experimental.pallas import tpu as pltpu

EPS = 1e-5
POOL = 8  # MaxPool / Upsample spatial factor (1, 8, 8)


def _elu(v):
    # exp argument clamped so the unselected branch never overflows.
    return jnp.where(v > 0, v, jnp.exp(jnp.minimum(v, 0.0)) - 1.0)


def _sigmoid_k(v):
    # in-kernel sigmoid: exp on the EUP + exact reciprocal (also EUP slot).
    return pl.reciprocal(1.0 + jnp.exp(-v), approx=False)


def _sigmoid_ref(v):
    return 1.0 / (1.0 + jnp.exp(-v))


# ----------------------------------------------------------------------------
# Per-generation VMEM plan + per-kernel tile sizing.
# ----------------------------------------------------------------------------
def _vmem_plan():
    cap = 64 << 20  # conservative floor (v7x has the smallest VMEM: 64 MiB)
    try:
        info = pltpu.get_tpu_info()
        cap = int(getattr(info, "vmem_capacity_bytes", cap) or cap)
    except Exception:
        pass
    limit = int(min(cap * 3 // 4, 96 << 20))    # ~48 MiB on v7x, ~96 MiB on v5e/v6e
    budget = int(limit * 0.85)                  # what block sizing may consume
    return limit, budget


def _sublane_multiple(dtype):
    return {4: 8, 2: 16, 1: 32}.get(jnp.dtype(dtype).itemsize, 8)


def _choose_tile(total, row_bytes, n_xblocks, budget, sub=8,
                 cap_bytes=8 << 20, slack=4 << 20):
    """Largest row-tile dividing `total` (== total or a multiple of `sub`) such
    that `n_xblocks` double-buffered x-sized blocks fit the VMEM budget; blocks
    are additionally capped at `cap_bytes` so the grid keeps enough pipeline
    steps (streaming kernels are at the HBM roofline well below huge blocks)."""
    cands = [t for t in range(total, 0, -1)
             if total % t == 0 and (t == total or t % sub == 0)]
    if not cands:
        cands = [total]
    feasible = [t for t in cands
                if 2 * n_xblocks * t * row_bytes + slack <= budget]
    if not feasible:
        raise ValueError(
            f"no tile of {total} rows x {row_bytes} B fits VMEM budget {budget} B; "
            f"tile the lane (H*W) dimension as well")
    capped = [t for t in feasible if t * row_bytes <= cap_bytes]
    return capped[0] if capped else feasible[-1]


# ----------------------------------------------------------------------------
# Kernel 1 (pass1): one read of x produces
#   (a) per-channel global-average-pool partial sums  (B, 1, C)   [MLP done in glue]
#   (b) the C->1 conv (BN folded) + ELU + MaxPool(1,8,8) map      (B, D, Hs*Ws)
# Grid (B, D/d_tile); B "parallel" (megacore), d_tile "arbitrary" (accumulator).
# ----------------------------------------------------------------------------
def _pass1_kernel(x_ref, wsc_ref, bsc_ref, sum_ref, p_ref, *, pool, H, W):
    dt = pl.program_id(1)

    x = x_ref[...].astype(jnp.float32)                      # (1, C, D_t, H*W) lane-dense

    # ---- squeeze path: global average pool partial sums ----------------------
    # NOTE(correctness): sum_ref's index_map is constant in dt and dt is an
    # "arbitrary" (sequential) axis, so this output block stays resident in
    # VMEM across the whole dt loop.  Do NOT mark dt parallel.
    @pl.when(dt == 0)
    def _():
        sum_ref[...] = jnp.zeros_like(sum_ref)
    sum_ref[...] += jnp.sum(jnp.sum(x, axis=3), axis=2)     # (1, C)

    # ---- spatial path: 1x1x1 conv C->1 (BN folded) + ELU ---------------------
    xc = x[0]                                               # (C, D_t, H*W)
    s = jnp.sum(xc * wsc_ref[...], axis=0) + bsc_ref[0]     # (C,1,1) bcast -> (D_t, H*W)
    s = _elu(s)

    # ---- MaxPool3d(1, pool, pool) on the flat (h*W + w) lane layout ----------
    # TODO(synk): at production spatial sizes replace the unaligned lane slices
    # with a pltpu.roll reduction tree; at 16x16 this is negligible.
    Hs, Ws = H // pool, W // pool
    cols = []
    for ih in range(Hs):
        band = s[:, ih * pool * W:(ih * pool + 1) * W]       # (D_t, W)
        for r in range(1, pool):
            h = ih * pool + r
            band = jnp.maximum(band, s[:, h * W:(h + 1) * W])
        for iw in range(Ws):
            seg = band[:, iw * pool:(iw + 1) * pool]         # (D_t, pool)
            cols.append(jnp.max(seg, axis=1, keepdims=True))
    p_ref[...] = jnp.concatenate(cols, axis=1)               # (D_t, Hs*Ws), lane-flat


def pass1(x4, w_sc1, b_sc1, *, H, W, pool, d_tile, vmem_limit):
    B, C, D, HW = x4.shape
    Hs, Ws = H // pool, W // pool
    nd = D // d_tile
    kern = functools.partial(_pass1_kernel, pool=pool, H=H, W=W)
    return pl.pallas_call(
        kern,
        out_shape=(jax.ShapeDtypeStruct((B, 1, C), jnp.float32),
                   jax.ShapeDtypeStruct((B, D, Hs * Ws), jnp.float32)),
        grid_spec=pltpu.PrefetchScalarGridSpec(
            num_scalar_prefetch=0,
            grid=(B, nd),
            in_specs=[
                pl.BlockSpec((1, C, d_tile, HW), lambda b, dt: (b, 0, dt, 0)),
                pl.BlockSpec((C, 1, 1), lambda b, dt: (0, 0, 0)),
                pl.BlockSpec(memory_space=pltpu.MemorySpace.SMEM),
            ],
            out_specs=[
                # constant in dt -> resident accumulator across the dt loop
                pl.BlockSpec((None, 1, C), lambda b, dt: (b, 0, 0)),
                pl.BlockSpec((None, d_tile, Hs * Ws), lambda b, dt: (b, dt, 0)),
            ],
        ),
        compiler_params=pltpu.CompilerParams(
            dimension_semantics=("parallel", "arbitrary"),
            vmem_limit_bytes=vmem_limit),
    )(x4, w_sc1, b_sc1)


# ----------------------------------------------------------------------------
# Kernel 2 (fuse): bilinear H/W upsample (combined Kronecker interpolation
# matrix) + 1x1x1 conv 1->C (BN folded) + sigmoid, fused with out = x*(y+z).
# x / out are presented as (B, C*D, H*W): sublane dim a multiple of 8 even when
# D < 8; gate y, scale2, shift2 and q are pre-expanded to per-(c,d) rows.
# ----------------------------------------------------------------------------
def _fuse_kernel(x_ref, q_ref, at_ref, y_ref, sc_ref, sh_ref, o_ref, *, use_mxu):
    q = q_ref[...].astype(jnp.float32)                      # (cd_t, Hs*Ws)
    at = at_ref[...]                                        # (Hs*Ws, H*W)
    if use_mxu:
        up = jnp.dot(q, at, preferred_element_type=jnp.float32)
    else:
        # tiny contraction: short unrolled VPU FMA chain beats a padded MXU matmul
        up = q[:, 0:1] * at[0:1, :]
        for j in range(1, q.shape[1]):
            up = up + q[:, j:j + 1] * at[j:j + 1, :]        # (cd_t, H*W)
    z = _sigmoid_k(up * sc_ref[...] + sh_ref[...])          # (cd_t, H*W)
    x = x_ref[...].astype(jnp.float32)                      # (cd_t, H*W)
    o_ref[...] = (x * (y_ref[...] + z)).astype(o_ref.dtype)


def fuse(x3, q_cd, a_t, y_cd, sc_cd, sh_cd, *, cd_tile, vmem_limit):
    B, CD, HW = x3.shape
    HsWs = q_cd.shape[2]
    ng = CD // cd_tile
    kern = functools.partial(_fuse_kernel, use_mxu=(cd_tile >= 64))
    return pl.pallas_call(
        kern,
        out_shape=jax.ShapeDtypeStruct((B, CD, HW), x3.dtype),
        grid_spec=pltpu.PrefetchScalarGridSpec(
            num_scalar_prefetch=0,
            grid=(B, ng),
            in_specs=[
                pl.BlockSpec((None, cd_tile, HW), lambda b, g: (b, g, 0)),
                pl.BlockSpec((None, cd_tile, HsWs), lambda b, g: (b, g, 0)),
                pl.BlockSpec((HsWs, HW), lambda b, g: (0, 0)),
                pl.BlockSpec((None, cd_tile, 1), lambda b, g: (b, g, 0)),
                pl.BlockSpec((cd_tile, 1), lambda b, g: (g, 0)),
                pl.BlockSpec((cd_tile, 1), lambda b, g: (g, 0)),
            ],
            out_specs=pl.BlockSpec((None, cd_tile, HW), lambda b, g: (b, g, 0)),
        ),
        compiler_params=pltpu.CompilerParams(
            dimension_semantics=("parallel", "parallel"),
            vmem_limit_bytes=vmem_limit),
    )(x3, q_cd, a_t, y_cd, sc_cd, sh_cd)


# ----------------------------------------------------------------------------
# Glue: parameter init, BN folding, PyTorch-style bilinear interpolation matrix.
# ----------------------------------------------------------------------------
def interp_matrix(out_size, in_size, scale):
    """Rows = PyTorch Upsample(mode='*linear', align_corners=False) weights."""
    dst = jnp.arange(out_size, dtype=jnp.float32)
    src = jnp.maximum((dst + 0.5) / scale - 0.5, 0.0)
    i0 = jnp.clip(jnp.floor(src).astype(jnp.int32), 0, in_size - 1)
    i1 = jnp.minimum(i0 + 1, in_size - 1)
    frac = src - i0.astype(jnp.float32)
    A = jnp.zeros((out_size, in_size), jnp.float32)
    A = A.at[jnp.arange(out_size), i0].add(1.0 - frac)
    A = A.at[jnp.arange(out_size), i1].add(frac)
    return A


def init_params(key, C, reduction=4):
    cr = C // reduction
    keys = iter(jax.random.split(key, 64))

    def u(shape, scale=0.4):
        return (jax.random.uniform(next(keys), shape, jnp.float32) - 0.5) * 2.0 * scale

    def bn(n):
        return dict(g=1.0 + u((n,), 0.2), b=u((n,), 0.2), rm=u((n,), 0.3),
                    rv=0.5 + jax.random.uniform(next(keys), (n,), jnp.float32))

    p = {}
    p['fc1_w'], p['fc1_b'], p['bn_fc1'] = u((cr, C)), u((cr,)), bn(cr)
    p['fc2_w'], p['fc2_b'], p['bn_fc2'] = u((C, cr)), u((C,)), bn(C)
    p['sc1_w'], p['sc1_b'], p['bn_sc1'] = u((1, C, 1, 1, 1)), u((1,)), bn(1)
    p['conv3_w'], p['bn_sc2'] = u((1, 1, 3, 3, 3)), bn(1)          # conv3d_bn_elu: bias=False
    p['sc2_w'], p['sc2_b'], p['bn_sc3'] = u((C, 1, 1, 1, 1)), u((C,)), bn(C)
    return p


def fold_params(p):
    C = p['fc1_w'].shape[1]

    def ss(bn):
        s = bn['g'] / jnp.sqrt(bn['rv'] + EPS)
        return s, bn['b'] - bn['rm'] * s

    f = {}
    s1, t1 = ss(p['bn_fc1'])
    f['w1'] = p['fc1_w'].T * s1[None, :]                      # (C, Cr)
    f['b1'] = (p['fc1_b'] * s1 + t1)[None, :]                 # (1, Cr)
    s2, t2 = ss(p['bn_fc2'])
    f['w2'] = p['fc2_w'].T * s2[None, :]                      # (Cr, C)
    f['b2'] = (p['fc2_b'] * s2 + t2)[None, :]                 # (1, C)

    sa, ta = ss(p['bn_sc1'])
    f['w_sc1'] = (p['sc1_w'][0, :, 0, 0, 0] * sa[0]).reshape(C, 1, 1)
    f['b_sc1'] = (p['sc1_b'] * sa + ta).reshape(1)

    sb, tb = ss(p['bn_sc2'])
    f['w_conv'] = (p['conv3_w'][0, 0] * sb[0]).reshape(27)
    f['b_conv'] = tb.reshape(1)

    sc_, tc = ss(p['bn_sc3'])
    f['scale2'] = p['sc2_w'][:, 0, 0, 0, 0] * sc_              # (C,)
    f['shift2'] = p['sc2_b'] * sc_ + tc                        # (C,)
    return f


def se_layer_cs(x, fold, pool=POOL):
    B, C, D, H, W = x.shape
    assert H % pool == 0 and W % pool == 0
    Hs, Ws = H // pool, W // pool
    HW = H * W
    HI = jax.lax.Precision.HIGHEST
    vmem_limit, budget = _vmem_plan()
    sub = _sublane_multiple(x.dtype)
    item = jnp.dtype(x.dtype).itemsize

    # ---------------- pass 1: one read of x --------------------------------
    # pass1 only double-buffers its x-input block (outputs are tiny): budget ~2*blk.
    d_tile = _choose_tile(D, C * HW * item, n_xblocks=1, budget=budget, sub=sub)
    x4 = x.reshape(B, C, D, HW)                 # lane-dense view, no HBM copy
    sums, p = pass1(x4, fold['w_sc1'], fold['b_sc1'],
                    H=H, W=W, pool=pool, d_tile=d_tile, vmem_limit=vmem_limit)

    # ---------------- SE MLP in plain JAX (tiny: (B,C)@(C,Cr)@(Cr,C)) -------
    m = sums[:, 0, :] * (1.0 / float(D * H * W))                       # (B, C)
    h = _elu(jnp.dot(m, fold['w1'], precision=HI) + fold['b1'])
    y = _sigmoid_ref(jnp.dot(h, fold['w2'], precision=HI) + fold['b2'])  # (B, C)

    # ---------------- 3x3x3 conv (1->1, BN folded) + ELU in XLA -------------
    # The pooled map is only B*D*Hs*Ws floats; a dedicated kernel is pure overhead.
    p3 = p.reshape(B, D, Hs, Ws)
    pp = jnp.pad(p3, ((0, 0), (1, 1), (1, 1), (1, 1)))
    wc = fold['w_conv'].reshape(3, 3, 3)
    q = jnp.zeros_like(p3)
    for kd in range(3):
        for kh in range(3):
            for kw in range(3):
                q = q + wc[kd, kh, kw] * pp[:, kd:kd + D, kh:kh + Hs, kw:kw + Ws]
    q = _elu(q + fold['b_conv'][0])                                     # (B, D, Hs, Ws)

    # ---------------- fuse: upsample + 1->C conv + sigmoid + x*(y+z) --------
    # fuse double-buffers x-in AND out (budget ~4*blk); x presented as (B, C*D, H*W).
    CD = C * D
    cd_tile = _choose_tile(CD, HW * item, n_xblocks=2, budget=budget, sub=sub)
    x3 = x.reshape(B, CD, HW)

    q_cd = jnp.broadcast_to(q.reshape(B, 1, D, Hs * Ws),
                            (B, C, D, Hs * Ws)).reshape(B, CD, Hs * Ws)
    y_cd = jnp.broadcast_to(y[:, :, None, None], (B, C, D, 1)).reshape(B, CD, 1)
    sc_cd = jnp.broadcast_to(fold['scale2'][:, None, None], (C, D, 1)).reshape(CD, 1)
    sh_cd = jnp.broadcast_to(fold['shift2'][:, None, None], (C, D, 1)).reshape(CD, 1)

    # combined bilinear (H and W) interpolation matrix, flattened: (Hs*Ws, H*W)
    a_h = interp_matrix(H, Hs, float(pool))
    a_w = interp_matrix(W, Ws, float(pool))
    a_t = jnp.kron(a_h, a_w).T

    out3 = fuse(x3, q_cd, a_t, y_cd, sc_cd, sh_cd,
                cd_tile=cd_tile, vmem_limit=vmem_limit)
    return out3.reshape(B, C, D, H, W)


# ----------------------------------------------------------------------------
# Pure-JAX reference (same folded parameters) for correctness checking.
# ----------------------------------------------------------------------------
def reference(x, fold, pool=POOL):
    HI = jax.lax.Precision.HIGHEST
    B, C, D, H, W = x.shape
    Hs, Ws = H // pool, W // pool
    m = x.mean(axis=(2, 3, 4))
    h = _elu(jnp.dot(m, fold['w1'], precision=HI) + fold['b1'])
    y = _sigmoid_ref(jnp.dot(h, fold['w2'], precision=HI) + fold['b2'])
    s = jnp.einsum('bcdhw,c->bdhw', x, fold['w_sc1'][:, 0, 0],
                   precision=HI) + fold['b_sc1'][0]
    s = _elu(s)
    p = s.reshape(B, D, Hs, pool, Ws, pool).max(axis=(3, 5))
    pp = jnp.pad(p, ((0, 0), (1, 1), (1, 1), (1, 1)))
    wc = fold['w_conv'].reshape(3, 3, 3)
    q = jnp.zeros_like(p)
    for kd in range(3):
        for kh in range(3):
            for kw in range(3):
                q = q + wc[kd, kh, kw] * pp[:, kd:kd + D, kh:kh + Hs, kw:kw + Ws]
    q = _elu(q + fold['b_conv'][0])
    A_h = interp_matrix(H, Hs, float(pool))
    A_w = interp_matrix(W, Ws, float(pool))
    up = jnp.einsum('hi,bdij,wj->bdhw', A_h, q, A_w, precision=HI)
    sc2 = fold['scale2']
    sh2 = fold['shift2']
    z = _sigmoid_ref(up[:, None] * sc2[None, :, None, None, None]
                     + sh2[None, :, None, None, None])
    return x * y[:, :, None, None, None] + x * z


if __name__ == "__main__":
    key = jax.random.PRNGKey(0)
    B, C, D, H, W = 2, 8, 4, 16, 16          # channel=8, reduction=4 -> hidden 2
    kx, kp = jax.random.split(key)
    x = jax.random.normal(kx, (B, C, D, H, W), jnp.float32)
    params = init_params(kp, C, reduction=4)
    fold = fold_params(params)

    run = jax.jit(se_layer_cs)
    out = jax.block_until_ready(run(x, fold))
    ref = jax.block_until_ready(reference(x, fold))

    assert out.shape == x.shape and out.dtype == x.dtype
    np.testing.assert_allclose(np.asarray(out), np.asarray(ref), rtol=1e-4, atol=1e-4)
    print("KERNEL_OK")
</pallas_src>

<mosaic_0001>
module attributes {stable_mosaic.version = 11 : i64} {
  func.func private @main(%arg0: i32) attributes {dimension_semantics = [#tpu.dimension_semantics<core_parallel>], iteration_bounds = array<i64: 2>, tpu.core_type = #tpu.core_type<sc_scalar_subcore>, window_params = []} {
    return
  }
}

module attributes {stable_mosaic.version = 11 : i64} {
  func.func private @main(%arg0: i32) attributes {dimension_semantics = [#tpu.dimension_semantics<core_parallel>], iteration_bounds = array<i64: 2>, tpu.core_type = #tpu.core_type<sc_scalar_subcore>, window_params = []} {
    return
  }
}

module attributes {stable_mosaic.version = 11 : i64} {
  func.func @_pass1_kernel(%arg0: i32, %arg1: i32, %arg2: memref<1x8x4x256xf32, #tpu.memory_space<vmem>>, %arg3: memref<8x1x1xf32, #tpu.memory_space<vmem>>, %arg4: memref<1xf32, #tpu.memory_space<smem>>, %arg5: memref<1x1x8xf32, #tpu.memory_space<vmem>>, %arg6: memref<1x4x4xf32, #tpu.memory_space<vmem>>) attributes {dimension_semantics = [#tpu.dimension_semantics<parallel>, #tpu.dimension_semantics<arbitrary>], iteration_bounds = array<i64: 2, 1>, scalar_prefetch = 0 : i64, scratch_operands = 0 : i64, tpu.core_type = #tpu.core_type<tc>, window_params = [{transform_indices = @transform_0, window_bounds = array<i64: 1, 8, 4, 256>}, {pipeline_mode = #tpu.pipeline_mode<synchronous>, transform_indices = @transform_1, window_bounds = array<i64: 8, 1, 1>}, {transform_indices = @transform_2, window_bounds = array<i64: 1>}, {transform_indices = @transform_3, window_bounds = array<i64: 1, 1, 8>}, {transform_indices = @transform_4, window_bounds = array<i64: 1, 4, 4>}]} {
    %c0 = arith.constant 0 : index
    %c0_0 = arith.constant 0 : index
    %c0_1 = arith.constant 0 : index
    %c0_2 = arith.constant 0 : index
    %0 = vector.load %arg2[%c0, %c0_0, %c0_1, %c0_2] : memref<1x8x4x256xf32, #tpu.memory_space<vmem>>, vector<1x8x4x256xf32>
    %c0_i32 = arith.constant 0 : i32
    %1 = arith.cmpi eq, %arg1, %c0_i32 : i32
    %2 = arith.extui %1 : i1 to i32
    %c0_i32_3 = arith.constant 0 : i32
    %3 = arith.cmpi ne, %2, %c0_i32_3 : i32
    scf.if %3 {
      %cst_26 = arith.constant 0.000000e+00 : f32
      %74 = vector.broadcast %cst_26 : f32 to vector<1x8xf32>
      %c0_27 = arith.constant 0 : index
      %c0_28 = arith.constant 0 : index
      %c0_29 = arith.constant 0 : index
      %75 = vector.load %arg5[%c0_27, %c0_28, %c0_29] : memref<1x1x8xf32, #tpu.memory_space<vmem>>, vector<1x1x8xf32>
      %76 = vector.shape_cast %75 : vector<1x1x8xf32> to vector<1x8xf32>
      %77 = vector.shape_cast %74 : vector<1x8xf32> to vector<1x1x8xf32>
      tpu.vector_store %arg5[%c0_27, %c0_28, %c0_29], %77 {strides = array<i32>} : memref<1x1x8xf32, #tpu.memory_space<vmem>>, vector<1x1x8xf32>,
    } else {
    }
    %c0_4 = arith.constant 0 : index
    %c0_5 = arith.constant 0 : index
    %c0_6 = arith.constant 0 : index
    %4 = vector.load %arg5[%c0_4, %c0_5, %c0_6] : memref<1x1x8xf32, #tpu.memory_space<vmem>>, vector<1x1x8xf32>
    %5 = vector.shape_cast %4 : vector<1x1x8xf32> to vector<1x8xf32>
    %cst = arith.constant dense<0.000000e+00> : vector<1x8x4xf32>
    %6 = vector.multi_reduction <add>, %0, %cst [3] : vector<1x8x4x256xf32> to vector<1x8x4xf32>
    %cst_7 = arith.constant dense<0.000000e+00> : vector<1x8xf32>
    %7 = vector.multi_reduction <add>, %6, %cst_7 [2] : vector<1x8x4xf32> to vector<1x8xf32>
    %8 = arith.addf %5, %7 : vector<1x8xf32>
    %c0_8 = arith.constant 0 : index
    %c0_9 = arith.constant 0 : index
    %c0_10 = arith.constant 0 : index
    %9 = vector.load %arg5[%c0_8, %c0_9, %c0_10] : memref<1x1x8xf32, #tpu.memory_space<vmem>>, vector<1x1x8xf32>
    %10 = vector.shape_cast %9 : vector<1x1x8xf32> to vector<1x8xf32>
    %11 = vector.shape_cast %8 : vector<1x8xf32> to vector<1x1x8xf32>
    tpu.vector_store %arg5[%c0_8, %c0_9, %c0_10], %11 {strides = array<i32>} : memref<1x1x8xf32, #tpu.memory_space<vmem>>, vector<1x1x8xf32>,
    %12 = vector.shape_cast %0 : vector<1x8x4x256xf32> to vector<8x4x256xf32>
    %c0_11 = arith.constant 0 : index
    %c0_12 = arith.constant 0 : index
    %c0_13 = arith.constant 0 : index
    %13 = vector.load %arg3[%c0_11, %c0_12, %c0_13] : memref<8x1x1xf32, #tpu.memory_space<vmem>>, vector<8x1x1xf32>
    %14 = vector.broadcast %13 : vector<8x1x1xf32> to vector<8x4x256xf32>
    %15 = arith.mulf %12, %14 : vector<8x4x256xf32>
    %cst_14 = arith.constant dense<0.000000e+00> : vector<4x256xf32>
    %16 = vector.multi_reduction <add>, %15, %cst_14 [0] : vector<8x4x256xf32> to vector<4x256xf32>
    %c0_15 = arith.constant 0 : index
    %17 = memref.load %arg4[%c0_15] : memref<1xf32, #tpu.memory_space<smem>>
    %18 = vector.broadcast %17 : f32 to vector<4x256xf32>
    %19 = arith.addf %16, %18 : vector<4x256xf32>
    %cst_16 = arith.constant 0.000000e+00 : f32
    %20 = vector.broadcast %cst_16 : f32 to vector<4x256xf32>
    %21 = arith.cmpf ogt, %19, %20 : vector<4x256xf32>
    %cst_17 = arith.constant 0.000000e+00 : f32
    %22 = vector.broadcast %cst_17 : f32 to vector<4x256xf32>
    %23 = arith.minimumf %19, %22 : vector<4x256xf32>
    %24 = math.exp %23 : vector<4x256xf32>
    %cst_18 = arith.constant 1.000000e+00 : f32
    %25 = vector.broadcast %cst_18 : f32 to vector<4x256xf32>
    %26 = arith.subf %24, %25 : vector<4x256xf32>
    %27 = arith.select %21, %19, %26 : vector<4x256xi1>, vector<4x256xf32>
    %28 = vector.extract_strided_slice %27 {offsets = [0, 0], sizes = [4, 16], strides = [1, 1]} : vector<4x256xf32> to vector<4x16xf32>
    %29 = vector.extract_strided_slice %27 {offsets = [0, 16], sizes = [4, 16], strides = [1, 1]} : vector<4x256xf32> to vector<4x16xf32>
    %30 = arith.maximumf %28, %29 : vector<4x16xf32>
    %31 = vector.extract_strided_slice %27 {offsets = [0, 32], sizes = [4, 16], strides = [1, 1]} : vector<4x256xf32> to vector<4x16xf32>
    %32 = arith.maximumf %30, %31 : vector<4x16xf32>
    %33 = vector.extract_strided_slice %27 {offsets = [0, 48], sizes = [4, 16], strides = [1, 1]} : vector<4x256xf32> to vector<4x16xf32>
    %34 = arith.maximumf %32, %33 : vector<4x16xf32>
    %35 = vector.extract_strided_slice %27 {offsets = [0, 64], sizes = [4, 16], strides = [1, 1]} : vector<4x256xf32> to vector<4x16xf32>
    %36 = arith.maximumf %34, %35 : vector<4x16xf32>
    %37 = vector.extract_strided_slice %27 {offsets = [0, 80], sizes = [4, 16], strides = [1, 1]} : vector<4x256xf32> to vector<4x16xf32>
    %38 = arith.maximumf %36, %37 : vector<4x16xf32>
    %39 = vector.extract_strided_slice %27 {offsets = [0, 96], sizes = [4, 16], strides = [1, 1]} : vector<4x256xf32> to vector<4x16xf32>
    %40 = arith.maximumf %38, %39 : vector<4x16xf32>
    %41 = vector.extract_strided_slice %27 {offsets = [0, 112], sizes = [4, 16], strides = [1, 1]} : vector<4x256xf32> to vector<4x16xf32>
    %42 = arith.maximumf %40, %41 : vector<4x16xf32>
    %43 = vector.extract_strided_slice %42 {offsets = [0, 0], sizes = [4, 8], strides = [1, 1]} : vector<4x16xf32> to vector<4x8xf32>
    %cst_19 = arith.constant dense<0xFF800000> : vector<4xf32>
    %44 = vector.multi_reduction <maximumf>, %43, %cst_19 [1] : vector<4x8xf32> to vector<4xf32>
    %45 = vector.shape_cast %44 : vector<4xf32> to vector<4x1xf32>
    %46 = vector.extract_strided_slice %42 {offsets = [0, 8], sizes = [4, 8], strides = [1, 1]} : vector<4x16xf32> to vector<4x8xf32>
    %cst_20 = arith.constant dense<0xFF800000> : vector<4xf32>
    %47 = vector.multi_reduction <maximumf>, %46, %cst_20 [1] : vector<4x8xf32> to vector<4xf32>
    %48 = vector.shape_cast %47 : vector<4xf32> to vector<4x1xf32>
    %49 = vector.extract_strided_slice %27 {offsets = [0, 128], sizes = [4, 16], strides = [1, 1]} : vector<4x256xf32> to vector<4x16xf32>
    %50 = vector.extract_strided_slice %27 {offsets = [0, 144], sizes = [4, 16], strides = [1, 1]} : vector<4x256xf32> to vector<4x16xf32>
    %51 = arith.maximumf %49, %50 : vector<4x16xf32>
    %52 = vector.extract_strided_slice %27 {offsets = [0, 160], sizes = [4, 16], strides = [1, 1]} : vector<4x256xf32> to vector<4x16xf32>
    %53 = arith.maximumf %51, %52 : vector<4x16xf32>
    %54 = vector.extract_strided_slice %27 {offsets = [0, 176], sizes = [4, 16], strides = [1, 1]} : vector<4x256xf32> to vector<4x16xf32>
    %55 = arith.maximumf %53, %54 : vector<4x16xf32>
    %56 = vector.extract_strided_slice %27 {offsets = [0, 192], sizes = [4, 16], strides = [1, 1]} : vector<4x256xf32> to vector<4x16xf32>
    %57 = arith.maximumf %55, %56 : vector<4x16xf32>
    %58 = vector.extract_strided_slice %27 {offsets = [0, 208], sizes = [4, 16], strides = [1, 1]} : vector<4x256xf32> to vector<4x16xf32>
    %59 = arith.maximumf %57, %58 : vector<4x16xf32>
    %60 = vector.extract_strided_slice %27 {offsets = [0, 224], sizes = [4, 16], strides = [1, 1]} : vector<4x256xf32> to vector<4x16xf32>
    %61 = arith.maximumf %59, %60 : vector<4x16xf32>
    %62 = vector.extract_strided_slice %27 {offsets = [0, 240], sizes = [4, 16], strides = [1, 1]} : vector<4x256xf32> to vector<4x16xf32>
    %63 = arith.maximumf %61, %62 : vector<4x16xf32>
    %64 = vector.extract_strided_slice %63 {offsets = [0, 0], sizes = [4, 8], strides = [1, 1]} : vector<4x16xf32> to vector<4x8xf32>
    %cst_21 = arith.constant dense<0xFF800000> : vector<4xf32>
    %65 = vector.multi_reduction <maximumf>, %64, %cst_21 [1] : vector<4x8xf32> to vector<4xf32>
    %66 = vector.shape_cast %65 : vector<4xf32> to vector<4x1xf32>
    %67 = vector.extract_strided_slice %63 {offsets = [0, 8], sizes = [4, 8], strides = [1, 1]} : vector<4x16xf32> to vector<4x8xf32>
    %cst_22 = arith.constant dense<0xFF800000> : vector<4xf32>
    %68 = vector.multi_reduction <maximumf>, %67, %cst_22 [1] : vector<4x8xf32> to vector<4xf32>
    %69 = vector.shape_cast %68 : vector<4xf32> to vector<4x1xf32>
    %70 = tpu.concatenate %45, %48, %66, %69 in 1 : vector<4x1xf32>, vector<4x1xf32>, vector<4x1xf32>, vector<4x1xf32> -> vector<4x4xf32>
    %c0_23 = arith.constant 0 : index
    %c0_24 = arith.constant 0 : index
    %c0_25 = arith.constant 0 : index
    %71 = vector.load %arg6[%c0_23, %c0_24, %c0_25] : memref<1x4x4xf32, #tpu.memory_space<vmem>>, vector<1x4x4xf32>
    %72 = vector.shape_cast %71 : vector<1x4x4xf32> to vector<4x4xf32>
    %73 = vector.shape_cast %70 : vector<4x4xf32> to vector<1x4x4xf32>
    tpu.vector_store %arg6[%c0_23, %c0_24, %c0_25], %73 {strides = array<i32>} : memref<1x4x4xf32, #tpu.memory_space<vmem>>, vector<1x4x4xf32>,
    return
  }
  func.func @transform_0(%arg0: i32, %arg1: i32) -> (i32, i32, i32, i32) {
    %c0_i32 = arith.constant 0 : i32
    %c0_i32_0 = arith.constant 0 : i32
    %c0_i32_1 = arith.constant 0 : i32
    return %arg0, %c0_i32, %arg1, %c0_i32_0 : i32, i32, i32, i32
  }
  func.func @transform_1(%arg0: i32, %arg1: i32) -> (i32, i32, i32) {
    %c0_i32 = arith.constant 0 : i32
    %c0_i32_0 = arith.constant 0 : i32
    %c0_i32_1 = arith.constant 0 : i32
    %c0_i32_2 = arith.constant 0 : i32
    return %c0_i32, %c0_i32_0, %c0_i32_1 : i32, i32, i32
  }
  func.func @transform_2(%arg0: i32, %arg1: i32) -> i32 {
    %c0_i32 = arith.constant 0 : i32
    %c0_i32_0 = arith.constant 0 : i32
    return %c0_i32 : i32
  }
  func.func @transform_3(%arg0: i32, %arg1: i32) -> (i32, i32, i32) {
    %c0_i32 = arith.constant 0 : i32
    %c0_i32_0 = arith.constant 0 : i32
    %c0_i32_1 = arith.constant 0 : i32
    return %arg0, %c0_i32, %c0_i32_0 : i32, i32, i32
  }
  func.func @transform_4(%arg0: i32, %arg1: i32) -> (i32, i32, i32) {
    %c0_i32 = arith.constant 0 : i32
    %c0_i32_0 = arith.constant 0 : i32
    return %arg0, %arg1, %c0_i32 : i32, i32, i32
  }
}

module attributes {stable_mosaic.version = 11 : i64} {
  func.func @_fuse_kernel(%arg0: i32, %arg1: i32, %arg2: memref<1x32x256xf32, #tpu.memory_space<vmem>>, %arg3: memref<1x32x4xf32, #tpu.memory_space<vmem>>, %arg4: memref<4x256xf32, #tpu.memory_space<vmem>>, %arg5: memref<1x32x1xf32, #tpu.memory_space<vmem>>, %arg6: memref<32x1xf32, #tpu.memory_space<vmem>>, %arg7: memref<32x1xf32, #tpu.memory_space<vmem>>, %arg8: memref<1x32x256xf32, #tpu.memory_space<vmem>>) attributes {dimension_semantics = [#tpu.dimension_semantics<parallel>, #tpu.dimension_semantics<parallel>], iteration_bounds = array<i64: 2, 1>, scalar_prefetch = 0 : i64, scratch_operands = 0 : i64, tpu.core_type = #tpu.core_type<tc>, window_params = [{transform_indices = @transform_0, window_bounds = array<i64: 1, 32, 256>}, {transform_indices = @transform_1, window_bounds = array<i64: 1, 32, 4>}, {pipeline_mode = #tpu.pipeline_mode<synchronous>, transform_indices = @transform_2, window_bounds = array<i64: 4, 256>}, {transform_indices = @transform_3, window_bounds = array<i64: 1, 32, 1>}, {transform_indices = @transform_4, window_bounds = array<i64: 32, 1>}, {transform_indices = @transform_5, window_bounds = array<i64: 32, 1>}, {transform_indices = @transform_6, window_bounds = array<i64: 1, 32, 256>}]} {
    %c0 = arith.constant 0 : index
    %c0_0 = arith.constant 0 : index
    %c0_1 = arith.constant 0 : index
    %0 = vector.load %arg3[%c0, %c0_0, %c0_1] : memref<1x32x4xf32, #tpu.memory_space<vmem>>, vector<1x32x4xf32>
    %1 = vector.shape_cast %0 : vector<1x32x4xf32> to vector<32x4xf32>
    %c0_2 = arith.constant 0 : index
    %c0_3 = arith.constant 0 : index
    %2 = vector.load %arg4[%c0_2, %c0_3] : memref<4x256xf32, #tpu.memory_space<vmem>>, vector<4x256xf32>
    %3 = vector.extract_strided_slice %1 {offsets = [0, 0], sizes = [32, 1], strides = [1, 1]} : vector<32x4xf32> to vector<32x1xf32>
    %4 = vector.extract_strided_slice %2 {offsets = [0, 0], sizes = [1, 256], strides = [1, 1]} : vector<4x256xf32> to vector<1x256xf32>
    %5 = vector.broadcast %3 : vector<32x1xf32> to vector<32x256xf32>
    %6 = vector.broadcast %4 : vector<1x256xf32> to vector<32x256xf32>
    %7 = arith.mulf %5, %6 : vector<32x256xf32>
    %8 = vector.extract_strided_slice %1 {offsets = [0, 1], sizes = [32, 1], strides = [1, 1]} : vector<32x4xf32> to vector<32x1xf32>
    %9 = vector.extract_strided_slice %2 {offsets = [1, 0], sizes = [1, 256], strides = [1, 1]} : vector<4x256xf32> to vector<1x256xf32>
    %10 = vector.broadcast %8 : vector<32x1xf32> to vector<32x256xf32>
    %11 = vector.broadcast %9 : vector<1x256xf32> to vector<32x256xf32>
    %12 = arith.mulf %10, %11 : vector<32x256xf32>
    %13 = arith.addf %7, %12 : vector<32x256xf32>
    %14 = vector.extract_strided_slice %1 {offsets = [0, 2], sizes = [32, 1], strides = [1, 1]} : vector<32x4xf32> to vector<32x1xf32>
    %15 = vector.extract_strided_slice %2 {offsets = [2, 0], sizes = [1, 256], strides = [1, 1]} : vector<4x256xf32> to vector<1x256xf32>
    %16 = vector.broadcast %14 : vector<32x1xf32> to vector<32x256xf32>
    %17 = vector.broadcast %15 : vector<1x256xf32> to vector<32x256xf32>
    %18 = arith.mulf %16, %17 : vector<32x256xf32>
    %19 = arith.addf %13, %18 : vector<32x256xf32>
    %20 = vector.extract_strided_slice %1 {offsets = [0, 3], sizes = [32, 1], strides = [1, 1]} : vector<32x4xf32> to vector<32x1xf32>
    %21 = vector.extract_strided_slice %2 {offsets = [3, 0], sizes = [1, 256], strides = [1, 1]} : vector<4x256xf32> to vector<1x256xf32>
    %22 = vector.broadcast %20 : vector<32x1xf32> to vector<32x256xf32>
    %23 = vector.broadcast %21 : vector<1x256xf32> to vector<32x256xf32>
    %24 = arith.mulf %22, %23 : vector<32x256xf32>
    %25 = arith.addf %19, %24 : vector<32x256xf32>
    %c0_4 = arith.constant 0 : index
    %c0_5 = arith.constant 0 : index
    %26 = vector.load %arg6[%c0_4, %c0_5] : memref<32x1xf32, #tpu.memory_space<vmem>>, vector<32x1xf32>
    %27 = vector.broadcast %26 : vector<32x1xf32> to vector<32x256xf32>
    %28 = arith.mulf %25, %27 : vector<32x256xf32>
    %c0_6 = arith.constant 0 : index
    %c0_7 = arith.constant 0 : index
    %29 = vector.load %arg7[%c0_6, %c0_7] : memref<32x1xf32, #tpu.memory_space<vmem>>, vector<32x1xf32>
    %30 = vector.broadcast %29 : vector<32x1xf32> to vector<32x256xf32>
    %31 = arith.addf %28, %30 : vector<32x256xf32>
    %cst = arith.constant 0.000000e+00 : f32
    %32 = vector.broadcast %cst : f32 to vector<32x256xf32>
    %33 = arith.subf %32, %31 : vector<32x256xf32>
    %34 = math.exp %33 : vector<32x256xf32>
    %cst_8 = arith.constant 1.000000e+00 : f32
    %35 = vector.broadcast %cst_8 : f32 to vector<32x256xf32>
    %36 = arith.addf %35, %34 : vector<32x256xf32>
    %37 = tpu.reciprocal %36 : vector<32x256xf32> -> vector<32x256xf32>
    %c0_9 = arith.constant 0 : index
    %c0_10 = arith.constant 0 : index
    %c0_11 = arith.constant 0 : index
    %38 = vector.load %arg2[%c0_9, %c0_10, %c0_11] : memref<1x32x256xf32, #tpu.memory_space<vmem>>, vector<1x32x256xf32>
    %39 = vector.shape_cast %38 : vector<1x32x256xf32> to vector<32x256xf32>
    %c0_12 = arith.constant 0 : index
    %c0_13 = arith.constant 0 : index
    %c0_14 = arith.constant 0 : index
    %40 = vector.load %arg5[%c0_12, %c0_13, %c0_14] : memref<1x32x1xf32, #tpu.memory_space<vmem>>, vector<1x32x1xf32>
    %41 = vector.shape_cast %40 : vector<1x32x1xf32> to vector<32x1xf32>
    %42 = vector.broadcast %41 : vector<32x1xf32> to vector<32x256xf32>
    %43 = arith.addf %42, %37 : vector<32x256xf32>
    %44 = arith.mulf %39, %43 : vector<32x256xf32>
    %c0_15 = arith.constant 0 : index
    %c0_16 = arith.constant 0 : index
    %c0_17 = arith.constant 0 : index
    %45 = vector.load %arg8[%c0_15, %c0_16, %c0_17] : memref<1x32x256xf32, #tpu.memory_space<vmem>>, vector<1x32x256xf32>
    %46 = vector.shape_cast %45 : vector<1x32x256xf32> to vector<32x256xf32>
    %47 = vector.shape_cast %44 : vector<32x256xf32> to vector<1x32x256xf32>
    tpu.vector_store %arg8[%c0_15, %c0_16, %c0_17], %47 {strides = array<i32>} : memref<1x32x256xf32, #tpu.memory_space<vmem>>, vector<1x32x256xf32>,
    return
  }
  func.func @transform_0(%arg0: i32, %arg1: i32) -> (i32, i32, i32) {
    %c0_i32 = arith.constant 0 : i32
    %c0_i32_0 = arith.constant 0 : i32
    return %arg0, %arg1, %c0_i32 : i32, i32, i32
  }
  func.func @transform_1(%arg0: i32, %arg1: i32) -> (i32, i32, i32) {
    %c0_i32 = arith.constant 0 : i32
    %c0_i32_0 = arith.constant 0 : i32
    return %arg0, %arg1, %c0_i32 : i32, i32, i32
  }
  func.func @transform_2(%arg0: i32, %arg1: i32) -> (i32, i32) {
    %c0_i32 = arith.constant 0 : i32
    %c0_i32_0 = arith.constant 0 : i32
    %c0_i32_1 = arith.constant 0 : i32
    return %c0_i32, %c0_i32_0 : i32, i32
  }
  func.func @transform_3(%arg0: i32, %arg1: i32) -> (i32, i32, i32) {
    %c0_i32 = arith.constant 0 : i32
    %c0_i32_0 = arith.constant 0 : i32
    return %arg0, %arg1, %c0_i32 : i32, i32, i32
  }
  func.func @transform_4(%arg0: i32, %arg1: i32) -> (i32, i32) {
    %c0_i32 = arith.constant 0 : i32
    %c0_i32_0 = arith.constant 0 : i32
    return %arg1, %c0_i32 : i32, i32
  }
  func.func @transform_5(%arg0: i32, %arg1: i32) -> (i32, i32) {
    %c0_i32 = arith.constant 0 : i32
    %c0_i32_0 = arith.constant 0 : i32
    return %arg1, %c0_i32 : i32, i32
  }
  func.func @transform_6(%arg0: i32, %arg1: i32) -> (i32, i32, i32) {
    %c0_i32 = arith.constant 0 : i32
    %c0_i32_0 = arith.constant 0 : i32
    return %arg0, %arg1, %c0_i32 : i32, i32, i32
  }
}

</mosaic_0001>

<bundles_post_ra>
// kernel: se_layer_cs.2
= control target key start
LH: loop header
LB: loop body
LE: loop exit
PB: predicated region body
PF: predicated region fallthrough
CT: control target
= control target key end

     0   :  { %s962_s17 = smov 0   ;;  %s964_s18 = smov 0   ;;  %s1128_s0 = inlined_call_operand.vmem [shape: f32[2,8,4,256], index: 0, kind: input, shape index: {}]   ;;  %s1129_s1 = inlined_call_operand.vmem [shape: f32[8,1,1], index: 1, kind: input, shape index: {}]   ;;  %s1130_s2 = inlined_call_operand.<no memory space> [shape: f32[1], index: 2, kind: input, shape index: {}]   ;;  %s1131_s3 = inlined_call_operand.vmem [shape: f32[2,1,8], index: 3, kind: output, shape index: {0}]   ;;  %s1132_s4 = inlined_call_operand.vmem [shape: f32[2,4,4], index: 4, kind: output, shape index: {1}]  }
   0x1   :  { %10 = sst [smem:[#allocation2]] %s1130_s2  ;;  %s966_s19 = smov 0  }
   0x2 LB: > { %s28_s2 = sadd.s32 1, %s918_s18  ;;  %p835_p0 = scmp.ge.s32.totalorder %s922_s19, 1  ;;  %s922_s19 = sphi %s966_s19, %s16_s19   ;;  %s918_s18 = sphi %s964_s18, %s1134_s18   ;;  %s914_s17 = sphi %s962_s17, %s1133_s17  }
   0x3   : > { %p30_p1 = scmp.ge.s32.totalorder %s28_s2, 2  ;;  %p186_p2 = scmp.lt.s32.totalorder %s922_s19, 3 }
   0x5   : > { %s1136_s2 = smov (%p30_p1, %s28_s2), 0  ;;  %p187_p3 = pnand %p835_p0, %p186_p2 }
   0x6   : > { %p221_p4 = scmp.lt.s32.totalorder (!%p187_p3), %s914_s17, 1  ;;  %s630_s14 = sld [smem:[#allocation2]] (!%p187_p3) }
   0x7   : > { %190 = sbr.rel (%p187_p3) target bundleno = 535 (0x217), region = 32  ;;  %s925_s15 = smov (!%p187_p3), 112  }
   0x8   : > { %s926_s16 = smov (!%p187_p3), 96   ;;  %s927_s20 = smov (!%p187_p3), 80  }
   0x9   : > { %s928_s21 = smov (!%p187_p3), 64   ;;  %s929_s22 = smov (!%p187_p3), 48  }
   0xa   : > { %s930_s23 = smov (!%p187_p3), 32   ;;  %s931_s24 = smov (!%p187_p3), 16  }
   0xc   : > { %v841_v0 = vld [vmem:[%s1129_s1 + $0x2] ss:$0 sm:$0xff]  ;;  %v839_v1 = vld [vmem:[%s1129_s1] ss:$0 sm:$0xff]  ;;  %v924_v2 = vmov 0   ;;  %s1138_s17 = smov (!%p221_p4, %s914_s17), 1 }
   0xd   : > { %887 = vset.pattern.permute.xlu1 %v924_v2  ;;  %886 = vset.pattern.permute.xlu0 %v924_v2  ;;  %v842_v3 = vld [vmem:[%s1129_s1 + $0x3] ss:$0 sm:$0xff]  ;;  %v840_v4 = vld [vmem:[%s1129_s1 + $0x1] ss:$0 sm:$0xff]  ;;  %v844_v5 = vld [vmem:[%s1129_s1 + $0x5] ss:$0 sm:$0xff]  ;;  %s232_s27 = scalar_lea.vmem %s1131_s3, %s1138_s17 }
   0xe   : > { %545 = vperm.xlu1 %887, %v841_v0   ;;  %537 = vperm.xlu0 %886, %v839_v1   ;;  %v843_v6 = vld [vmem:[%s1129_s1 + $0x4] ss:$0 sm:$0xff]  ;;  %v846_v7 = vld [vmem:[%s1129_s1 + $0x7] ss:$0 sm:$0xff]  ;;  %v845_v8 = vld [vmem:[%s1129_s1 + $0x6] ss:$0 sm:$0xff] }
   0xf   : > { %s851_s10 = sshll.u32 %s1138_s17, 6  ;;  %vm279_vm0 = vcmask 1043456   ;;  %vm362_vm3 = vcmask 1041409   ;;  %vm364_vm4 = vcmask 1042434   ;;  %vm366_vm5 = vcmask 1043459   ;;  %s838_s28 = sshll.u32 %s1138_s17, 2 }
  0x10   : > { %s229_s13 = scalar_lea.vmem %s1128_s0, %s851_s10  ;;  %vm368_vm6 = vcmask 1044484   ;;  %vm370_vm7 = vcmask 1045509   ;;  %vm372_vm8 = vcmask 1046534   ;;  %vm374_vm9 = vcmask 1047559   ;;  %s239_s5 = scalar_lea.vmem %s1132_s4, %s838_s28 }
  0x11   : > { %v240_v9 = vld [vmem:[%s229_s13] sm:$0xff]  ;;  %v242_v11 = vld [vmem:[%s229_s13 + $0x10] sm:$0xff]  ;;  %v241_v12 = vld [vmem:[%s229_s13 + $0x8] sm:$0xff]  ;;  %vm377_vm10 = vcmask 31744   ;;  %vm679_vm11 = vcmask 126016   ;;  %vm675_vm12 = vcmask 60416  }
  0x12   : > { %549 = vperm.xlu1 %887, %v842_v3   ;;  %541 = vperm.xlu0 %886, %v840_v4   ;;  %v263_v10 = vcombine.high %v240_v9, %v240_v9  ;;  %v280_v13 = vsel %vm279_vm0, %v240_v9, 0.0  ;;  %v265_v15 = vcombine.high %v242_v11, %v242_v11  ;;  %v264_v16 = vcombine.high %v241_v12, %v241_v12  ;;  %v243_v17 = vld [vmem:[%s229_s13 + $0x18] sm:$0xff]  ;;  %v244_v18 = vld [vmem:[%s229_s13 + $0x20] sm:$0xff]  ;;  %v245_v26 = vld [vmem:[%s229_s13 + $0x28] sm:$0xff] }
  0x13   : > { %v290_v20 = vsel %vm279_vm0, %v242_v11, 0.0  ;;  %v266_v22 = vcombine.high %v243_v17, %v243_v17  ;;  %v285_v23 = vsel %vm279_vm0, %v241_v12, 0.0  ;;  %v267_v25 = vcombine.high %v244_v18, %v244_v18  ;;  %v1020_v27 = vld [vmem:[%s229_s13 + $0x30] sm:$0xff]  ;;  %v247_v36 = vld [vmem:[%s229_s13 + $0x38] sm:$0xff] }
  0x14   : > { %v281_v14 = vsel %vm279_vm0, %v263_v10, 0.0  ;;  %v291_v21 = vsel %vm279_vm0, %v265_v15, 0.0  ;;  %v286_v24 = vsel %vm279_vm0, %v264_v16, 0.0  ;;  %v295_v30 = vsel %vm279_vm0, %v243_v17, 0.0 }
  0x15   : > { %v282_v19 = vadd.f32 %v281_v14, %v280_v13  ;;  %v292_v28 = vadd.f32 %v291_v21, %v290_v20  ;;  %v287_v29 = vadd.f32 %v286_v24, %v285_v23  ;;  %v296_v31 = vsel %vm279_vm0, %v266_v22, 0.0 }
  0x16   : > { %557 = vperm.xlu1 %887, %v844_v5   ;;  %553 = vperm.xlu0 %886, %v843_v6   ;;  %v268_v32 = vcombine.high %v245_v26, %v245_v26  ;;  %v300_v33 = vsel %vm279_vm0, %v244_v18, 0.0  ;;  %v301_v34 = vsel %vm279_vm0, %v267_v25, 0.0  ;;  %v269_v35 = vcombine.high %v1020_v27, %v1020_v27 }
  0x17   : > { %v297_v37 = vadd.f32 %v296_v31, %v295_v30  ;;  %v302_v38 = vadd.f32 %v301_v34, %v300_v33  ;;  %v305_v39 = vsel %vm279_vm0, %v245_v26, 0.0  ;;  %v270_v41 = vcombine.high %v247_v36, %v247_v36 }
  0x18   : > { %v306_v40 = vsel %vm279_vm0, %v268_v32, 0.0  ;;  %v310_v42 = vsel %vm279_vm0, %v1020_v27, 0.0  ;;  %v311_v43 = vsel %vm279_vm0, %v269_v35, 0.0  ;;  %v315_v46 = vsel %vm279_vm0, %v247_v36, 0.0 }
  0x19   : > { %v307_v44 = vadd.f32 %v306_v40, %v305_v39  ;;  %v312_v45 = vadd.f32 %v311_v43, %v310_v42  ;;  %v316_v47 = vsel %vm279_vm0, %v270_v41, 0.0  ;;  %v631_v35 = vstv %s630_s14 }
  0x1a   : > { %565 = vperm.xlu1 %887, %v846_v7   ;;  %561 = vperm.xlu0 %886, %v845_v8   ;;  %v317_v48 = vadd.f32 %v316_v47, %v315_v46  ;;  %vm252_vm13 = vcmask 57344   ;;  %vm718_vm14 = vcmask 7168   ;;  %vm720_vm15 = vcmask 15360  }
  0x39   : > { %283 = vadd.xlane.f32.xlu0 %v282_v19 }
  0x3d   : > { %293 = vadd.xlane.f32.xlu0 %v292_v28 }
  0x3e   : > { %288 = vadd.xlane.f32.xlu1 %v287_v29 }
  0x41   : > { %298 = vadd.xlane.f32.xlu0 %v297_v37 }
  0x42   : > { %303 = vadd.xlane.f32.xlu1 %v302_v38 }
  0x45   : > { %308 = vadd.xlane.f32.xlu0 %v307_v44 }
  0x46   : > { %313 = vadd.xlane.f32.xlu1 %v312_v45 }
  0x49   : > { %318 = vadd.xlane.f32.xlu0 %v317_v48 }
  0x89   : > { %v546_v49 = vpop.permute.xlu1 %545  ;;  %v538_v50 = vpop.permute.xlu0 %537 }
  0x8a   : > { %v568_v51 = vmul.f32 %v538_v50, %v240_v9  ;;  %v570_v52 = vmul.f32 %v546_v49, %v242_v11 }
  0x8c   : > { %v584_v55 = vcombine.high %v568_v51, %v568_v51  ;;  %v586_v58 = vcombine.high %v570_v52, %v570_v52  ;;  %v600_v59 = vsel %vm279_vm0, %v568_v51, 0.0  ;;  %v603_v62 = vsel %vm279_vm0, %v570_v52, 0.0 }
  0x8d   : > { %v550_v53 = vpop.permute.xlu1 %549  ;;  %v542_v54 = vpop.permute.xlu0 %541  ;;  %v328_v52 = vlaneseq }
  0x8e   : > { %v571_v56 = vmul.f32 %v550_v53, %v243_v17  ;;  %v569_v57 = vmul.f32 %v542_v54, %v241_v12  ;;  %v615_v3 = vsel %vm279_vm0, %v584_v55, 0.0  ;;  %v618_v9 = vsel %vm279_vm0, %v586_v58, 0.0 }
  0x8f   : > { %v329_v53 = vand.u32 127, %v328_v52  ;;  %v1062_v54 = vshrl.u32 %v328_v52, 7 }
  0x90   : > { %v585_v60 = vcombine.high %v569_v57, %v569_v57  ;;  %v601_v61 = vsel %vm279_vm0, %v569_v57, 0.0  ;;  %v587_v63 = vcombine.high %v571_v56, %v571_v56  ;;  %v605_v10 = vsel %vm279_vm0, %v571_v56, 0.0 }
  0x91   : > { %v602_v0 = vadd.f32 %v601_v61, %v600_v59  ;;  %v558_v1 = vpop.permute.xlu1 %557  ;;  %v554_v2 = vpop.permute.xlu0 %553  ;;  %v1067_v56 = vsub.s32 %v329_v53, %v1062_v54 }
  0x92   : > { %v616_v4 = vsel %vm279_vm0, %v585_v60, 0.0  ;;  %v573_v5 = vmul.f32 %v558_v1, %v245_v26  ;;  %v572_v6 = vmul.f32 %v554_v2, %v244_v18  ;;  %v620_v12 = vsel %vm279_vm0, %v587_v63, 0.0 }
  0x93   : > { %v604_v7 = vadd.f32 %v603_v62, %v602_v0  ;;  %v617_v8 = vadd.f32 %v616_v4, %v615_v3 }
  0x94   : > { %v588_v11 = vcombine.high %v572_v6, %v572_v6  ;;  %v589_v17 = vcombine.high %v573_v5, %v573_v5  ;;  %v607_v19 = vsel %vm279_vm0, %v572_v6, 0.0  ;;  %v609_v23 = vsel %vm279_vm0, %v573_v5, 0.0 }
  0x95   : > { %v619_v13 = vadd.f32 %v618_v9, %v617_v8  ;;  %v606_v14 = vadd.f32 %v605_v10, %v604_v7  ;;  %v566_v15 = vpop.permute.xlu1 %565  ;;  %v562_v16 = vpop.permute.xlu0 %561 }
  0x96   : > { %v575_v20 = vmul.f32 %v566_v15, %v247_v36  ;;  %v574_v18 = vmul.f32 %v562_v16, %v1020_v27  ;;  %v622_v24 = vsel %vm279_vm0, %v588_v11, 0.0  ;;  %v624_v29 = vsel %vm279_vm0, %v589_v17, 0.0 }
  0x97   : > { %v608_v21 = vadd.f32 %v607_v19, %v606_v14  ;;  %v621_v22 = vadd.f32 %v620_v12, %v619_v13 }
  0x98   : > { %v590_v25 = vcombine.high %v574_v18, %v574_v18  ;;  %v591_v30 = vcombine.high %v575_v20, %v575_v20  ;;  %v611_v31 = vsel %vm279_vm0, %v574_v18, 0.0  ;;  %v613_v34 = vsel %vm279_vm0, %v575_v20, 0.0 }
  0x99   : > { %v623_v26 = vadd.f32 %v622_v24, %v621_v22  ;;  %v610_v28 = vadd.f32 %v609_v23, %v608_v21 }
  0x9a   : > { %v626_v27 = vsel %vm279_vm0, %v590_v25, 0.0  ;;  %v628_v38 = vsel %vm279_vm0, %v591_v30, 0.0  ;;  %vm722_vm0 = vcmask 23552  }
  0x9b   : > { %v612_v32 = vadd.f32 %v611_v31, %v610_v28  ;;  %v625_v33 = vadd.f32 %v624_v29, %v623_v26 }
  0x9d   : > { %v614_v36 = vadd.f32 %v613_v34, %v612_v32  ;;  %v627_v37 = vadd.f32 %v626_v27, %v625_v33  ;;  %v932_v32 = vmov 1966171168   ;;  %v384_v27 = vsub.s32 0, %v1062_v54 }
  0x9e   : > { %v419_v33 = vunpack.c.l.s4 %v932_v32 }
  0x9f   : > { %v629_v39 = vadd.f32 %v628_v38, %v627_v37  ;;  %v632_v40 = vadd.f32 %v631_v35, %v614_v36  ;;  %v388_v36 = vsub.s32 1, %v1062_v54  ;;  %v392_v37 = vsub.s32 2, %v1062_v54 }
  0xa0   : > { %v396_v38 = vsub.s32 3, %v1062_v54 }
  0xa1   : > { %v633_v41 = vadd.f32 %v631_v35, %v629_v39  ;;  %v636_v42 = vmin.f32 %v632_v40, 0.0  ;;  %vm634_vm1 = vcmp.gt.f32.partialorder %v632_v40, 0.0  ;;  %v400_v39 = vsub.s32 4, %v1062_v54 }
  0xa3   : > { %v637_v43 = vmin.f32 %v633_v41, 0.0  ;;  %v638_v44 = vmul.f32 1.442695, %v636_v42  ;;  %vm635_vm2 = vcmp.gt.f32.partialorder %v633_v41, 0.0 }
  0xa5   : > { %896 = vpow2.f32 %v638_v44  ;;  %v640_v45 = vmul.f32 1.442695, %v637_v43  ;;  %v408_v43 = vsub.s32 6, %v1062_v54  ;;  %v412_v44 = vsub.s32 7, %v1062_v54 }
  0xa7   : > { %898 = vpow2.f32 %v640_v45 }
  0xb2   : > { %v897_v46 = vpop.eup %896 }
  0xb3   : > { %v847_v47 = vadd.f32 -1.0, %v897_v46 }
  0xb4   : > { %v899_v48 = vpop.eup %898 }
  0xb5   : > { %v848_v49 = vadd.f32 -1.0, %v899_v48  ;;  %v1052_v50 = vsel %vm634_vm1, %v632_v40, %v847_v47  ;;  %v404_v40 = vsub.s32 5, %v1062_v54  ;;  %v420_v47 = vunpack.c.0.s8 %v419_v33 }
  0xb6   : > { %647 = vrot.lane.b32.xlu0 %v1052_v50, %s925_s15  ;;  %vm724_vm1 = vcmask 27648  }
  0xb7   : > { %v1056_v51 = vsel %vm635_vm2, %v633_v41, %v848_v49 }
  0xba   : > { %688 = vrot.lane.b32.xlu0 %v1056_v51, %s926_s16 }
  0xbe   : > { %692 = vrot.lane.b32.xlu0 %v1056_v51, %s927_s20 }
  0xc2   : > { %696 = vrot.lane.b32.xlu0 %v1056_v51, %s928_s21  ;;  %v284_v55 = vpop.xlane.xlu0 %283 }
  0xc3   : > { %v333_v59 = vrot.slane %v284_v55, %v1067_v56 }
  0xc6   : > { %700 = vrot.lane.b32.xlu0 %v1056_v51, %s929_s22  ;;  %v294_v57 = vpop.xlane.xlu0 %293 }
  0xc7   : > { %v289_v58 = vpop.xlane.xlu1 %288  ;;  %v341_v61 = vrot.slane %v294_v57, %v1067_v56 }
  0xc8   : > { %v337_v60 = vrot.slane %v289_v58, %v1067_v56 }
  0xca   : > { %v363_v62 = vsel %vm362_vm3, %v337_v60, %v333_v59  ;;  %704 = vrot.lane.b32.xlu0 %v1056_v51, %s930_s23  ;;  %v299_v63 = vpop.xlane.xlu0 %298 }
  0xcb   : > { %v365_v0 = vsel %vm364_vm4, %v341_v61, %v363_v62  ;;  %v345_v1 = vrot.slane %v299_v63, %v1067_v56  ;;  %v304_v2 = vpop.xlane.xlu1 %303 }
  0xcc   : > { %v349_v3 = vrot.slane %v304_v2, %v1067_v56 }
  0xcd   : > { %v367_v4 = vsel %vm366_vm5, %v345_v1, %v365_v0 }
  0xce   : > { %708 = vrot.lane.b32.xlu0 %v1056_v51, %s931_s24  ;;  %v309_v5 = vpop.xlane.xlu0 %308  ;;  %v369_v8 = vsel %vm368_vm6, %v349_v3, %v367_v4  ;;  %v423_v4 = vsub.s32 %v420_v47, %v1062_v54 }
  0xcf   : > { %v353_v6 = vrot.slane %v309_v5, %v1067_v56  ;;  %v314_v7 = vpop.xlane.xlu1 %313 }
  0xd0   : > { %v357_v9 = vrot.slane %v314_v7, %v1067_v56 }
  0xd1   : > { %v371_v10 = vsel %vm370_vm7, %v353_v6, %v369_v8 }
  0xd2   : > { %v319_v11 = vpop.xlane.xlu0 %318  ;;  %v373_v13 = vsel %vm372_vm8, %v357_v9, %v371_v10 }
  0xd3   : > { %v361_v12 = vrot.slane %v319_v11, %v1067_v56 }
  0xd5   : > { %v375_v14 = vsel %vm374_vm9, %v361_v12, %v373_v13 }
  0xd6   : > { %v378_v15 = vsel %vm377_vm10, %v375_v14, 0.0 }
  0xd7   : > { %379 = vadd.xlane.f32.xlu1 %v378_v15 }
  0xe8   : > { %651 = vrot.lane.b32.xlu1 %v1052_v50, %s926_s16 }
  0xec   : > { %655 = vrot.lane.b32.xlu1 %v1052_v50, %s927_s20 }
  0xf0   : > { %659 = vrot.lane.b32.xlu1 %v1052_v50, %s928_s21 }
  0xf4   : > { %684 = vrot.lane.b32.xlu1 %v1056_v51, %s925_s15 }
  0xf8   : > { %663 = vrot.lane.b32.xlu1 %v1052_v50, %s929_s22 }
  0xfc   : > { %667 = vrot.lane.b32.xlu1 %v1052_v50, %s930_s23 }
 0x100   : > { %671 = vrot.lane.b32.xlu1 %v1052_v50, %s931_s24 }
 0x128   : > { %v648_v16 = vpop.permute.xlu0 %647 }
 0x129   : > { %v650_v25 = vmax.f32 %v1052_v50, %v648_v16 }
 0x12c   : > { %v689_v17 = vpop.permute.xlu0 %688 }
 0x130   : > { %v693_v18 = vpop.permute.xlu0 %692 }
 0x134   : > { %v697_v22 = vpop.permute.xlu0 %696 }
 0x138   : > { %v701_v28 = vpop.permute.xlu0 %700 }
 0x13c   : > { %v705_v45 = vpop.permute.xlu0 %704 }
 0x140   : > { %v709_v0 = vpop.permute.xlu0 %708 }
 0x160   : > { %v380_v19 = vpop.xlane.xlu1 %379 }
 0x161   : > { %v385_v50 = vrot.slane %v380_v19, %v384_v27  ;;  %v393_v52 = vrot.slane %v380_v19, %v392_v37  ;;  %v397_v53 = vrot.slane %v380_v19, %v396_v38  ;;  %v401_v55 = vrot.slane %v380_v19, %v400_v39 }
 0x162   : > { %v405_v57 = vrot.slane %v380_v19, %v404_v40  ;;  %v409_v60 = vrot.slane %v380_v19, %v408_v43  ;;  %v413_v61 = vrot.slane %v380_v19, %v412_v44 }
 0x163   : > { %v415_v2 = vcombine.low %v393_v52, %v397_v53 }
 0x164   : > { %v652_v20 = vpop.permute.xlu1 %651  ;;  %v416_v3 = vcombine.low %v401_v55, %v405_v57  ;;  %v417_v8 = vcombine.low %v409_v60, %v413_v61 }
 0x165   : > { %v654_v29 = vmax.f32 %v650_v25, %v652_v20  ;;  %v431_v11 = vrot.slane %v415_v2, %v423_v4 }
 0x166   : > { %v438_v12 = vrot.slane %v416_v3, %v423_v4  ;;  %v445_v13 = vrot.slane %v417_v8, %v423_v4 }
 0x168   : > { %v656_v21 = vpop.permute.xlu1 %655  ;;  %v447_v16 = vcombine.low %v438_v12, %v445_v13 }
 0x169   : > { %v658_v34 = vmax.f32 %v654_v29, %v656_v21 }
 0x16c   : > { %v660_v23 = vpop.permute.xlu1 %659 }
 0x16d   : > { %v662_v41 = vmax.f32 %v658_v34, %v660_v23 }
 0x170   : > { %v685_v24 = vpop.permute.xlu1 %684 }
 0x171   : > { %v687_v26 = vmax.f32 %v1056_v51, %v685_v24  ;;  %v389_v51 = vrot.slane %v380_v19, %v388_v36  ;;  %v933_v19 = vmov 0.0  }
 0x172   : > { %253 = vst.msk [vmem:[%s232_s27] sm:$0x1] %vm252_vm13, %v933_v19 }
 0x173   : > { %v691_v30 = vmax.f32 %v687_v26, %v689_v17  ;;  %v414_v1 = vcombine.low %v385_v50, %v389_v51  ;;  %v461_v17 = vrot.slane %v447_v16, %v423_v4 }
 0x174   : > { %v664_v31 = vpop.permute.xlu1 %663 }
 0x175   : > { %v695_v35 = vmax.f32 %v691_v30, %v693_v18  ;;  %v666_v48 = vmax.f32 %v662_v41, %v664_v31  ;;  %v424_v9 = vrot.slane %v414_v1, %v423_v4 }
 0x177   : > { %v699_v42 = vmax.f32 %v695_v35, %v697_v22  ;;  %v446_v15 = vcombine.low %v424_v9, %v431_v11 }
 0x178   : > { %v668_v46 = vpop.permute.xlu1 %667 }
 0x179   : > { %v703_v49 = vmax.f32 %v699_v42, %v701_v28  ;;  %v670_v58 = vmax.f32 %v666_v48, %v668_v46  ;;  %v454_v54 = vrot.slane %v446_v15, %v423_v4  ;;  %v254_v28 = vld [vmem:[%s232_s27] sm:$0x1] }
 0x17b   : > { %v707_v59 = vmax.f32 %v703_v49, %v705_v45  ;;  %v462_v20 = vcombine.low %v454_v54, %v461_v17 }
 0x17c   : > { %v672_v62 = vpop.permute.xlu1 %671 }
 0x17d   : > { %v674_v63 = vmax.f32 %v670_v58, %v672_v62  ;;  %v711_v7 = vmax.f32 %v707_v59, %v709_v0 }
 0x17f   : > { %v680_v5 = vsel %vm679_vm11, %v674_v63, -inf  ;;  %v676_v6 = vsel %vm675_vm12, %v674_v63, -inf  ;;  %v712_v10 = vsel %vm675_vm12, %v711_v7, -inf  ;;  %v715_v14 = vsel %vm679_vm11, %v711_v7, -inf }
 0x180   : > { %681 = vmax.xlane.f32.xlu0 %v680_v5  ;;  %677 = vmax.xlane.f32.xlu1 %v676_v6 }
 0x184   : > { %713 = vmax.xlane.f32.xlu0 %v712_v10 }
 0x188   : > { %716 = vmax.xlane.f32.xlu0 %v715_v14 }
 0x191   : > { %464 = vperm.xlu1 %887, %v462_v20  }
 0x209   : > { %v678_v18 = vpop.xlane.xlu1 %677  ;;  %v682_v21 = vpop.xlane.xlu0 %681 }
 0x20a   : > { %v719_v25 = vsel %vm718_vm14, %v678_v18, %v682_v21 }
 0x20d   : > { %v465_v22 = vpop.permute.xlu1 %464  ;;  %v714_v23 = vpop.xlane.xlu0 %713 }
 0x20e   : > { %v469_v24 = vrot.slane %v465_v22, %v1067_v56  ;;  %v721_v29 = vsel %vm720_vm15, %v719_v25, %v714_v23 }
 0x210   : > { %v476_v26 = vrot.slane %v469_v24, %v423_v4 }
 0x211   : > { %v717_v30 = vpop.xlane.xlu0 %716 }
 0x212   : > { %v483_v31 = vrot.slane %v476_v26, %v423_v4  ;;  %v723_v32 = vsel %vm722_vm0, %v721_v29, %v717_v30 }
 0x213   : > { %725 = vst.msk [vmem:[%s239_s5] sm:$0xf] %vm724_vm1, %v723_v32 }
 0x214   : > { %v485_v33 = vadd.f32 %v483_v31, %v254_v28 }
 0x216   : > { %487 = vst.msk [vmem:[%s232_s27] sm:$0x1] %vm252_vm13, %v485_v33 }
 0x217 PF: > { %s16_s19 = sadd.s32 1, %s922_s19   ;;  %s1133_s17 = smov %s918_s18 }
 0x218   : > { %p13_p5 = scmp.ge.s32.totalorder %s16_s19, 4   ;;  %s1134_s18 = smov %s1136_s2 }
 0x21a   :  { %15 = sbr.rel (!%p13_p5) target bundleno = 2 (0x2), region = 78 }

// kernel: se_layer_cs.3
= control target key start
LH: loop header
LB: loop body
LE: loop exit
PB: predicated region body
PF: predicated region fallthrough
CT: control target
= control target key end

     0   :  { %s1089_s21 = smov 0   ;;  %s1091_s22 = smov 0   ;;  %s1215_s0 = inlined_call_operand.vmem [shape: f32[2,32,256], index: 0, kind: input, shape index: {}]   ;;  %s1216_s1 = inlined_call_operand.vmem [shape: f32[2,32,4], index: 1, kind: input, shape index: {}]   ;;  %s1217_s2 = inlined_call_operand.vmem [shape: f32[4,256], index: 2, kind: input, shape index: {}]   ;;  %s1218_s3 = inlined_call_operand.vmem [shape: f32[2,32,1], index: 3, kind: input, shape index: {}]   ;;  %s1219_s4 = inlined_call_operand.vmem [shape: f32[32,1], index: 4, kind: input, shape index: {}]   ;;  %s1220_s5 = inlined_call_operand.vmem [shape: f32[32,1], index: 5, kind: input, shape index: {}]   ;;  %s1221_s6 = inlined_call_operand.vmem [shape: f32[2,32,256], index: 6, kind: output, shape index: {}]  }
   0x1   :  { %s1093_s23 = smov 0  }
   0x2 LB: > { %s28_s24 = sadd.s32 1, %s1044_s22  ;;  %p942_p0 = scmp.ge.s32.totalorder %s1048_s23, 1  ;;  %s1048_s23 = sphi %s1093_s23, %s16_s23   ;;  %s1044_s22 = sphi %s1091_s22, %s1223_s22   ;;  %s1040_s21 = sphi %s1089_s21, %s1222_s21  }
   0x3   : > { %p30_p1 = scmp.ge.s32.totalorder %s28_s24, 2  ;;  %p290_p2 = scmp.lt.s32.totalorder %s1048_s23, 3 }
   0x5   : > { %s1225_s24 = smov (%p30_p1, %s28_s24), 0  ;;  %p291_p3 = pnand %p942_p0, %p290_p2 }
   0x6   : > { %p359_p4 = scmp.lt.s32.totalorder (!%p291_p3), %s1040_s21, 1 }
   0x7   : > { %294 = sbr.rel (%p291_p3) target bundleno = 238 (0xee), region = 44 }
   0xc   : > { %v1050_v0 = vmov 1   ;;  %v1051_v1 = vmov 0   ;;  %s1227_s21 = smov (!%p359_p4, %s1040_s21), 1  ;;  %v1052_v6 = vmov 2   ;;  %v1053_v7 = vmov 3   ;;  %v615_v8 = vld [vmem:[%s1219_s4 + $0x8] sm:$0xff] }
   0xd   : > { %986 = vset.pattern.permute.xlu0 %v1050_v0  ;;  %985 = vset.pattern.permute.xlu1 %v1051_v1  ;;  %s954_s25 = sshll.u32 %s1227_s21, 5  ;;  %v646_v9 = vld [vmem:[%s1220_s5] sm:$0xff]  ;;  %v648_v10 = vld [vmem:[%s1220_s5 + $0x10] sm:$0xff]  ;;  %v617_v15 = vld [vmem:[%s1219_s4 + $0x18] sm:$0xff]  ;;  %v438_v24 = vlaneseq  ;;  %s953_s30 = sshll.u32 %s1227_s21, 6 }
   0xe   : > { %s377_s28 = scalar_lea.vmem %s1216_s1, %s954_s25  ;;  %v614_v11 = vld [vmem:[%s1219_s4] sm:$0xff]  ;;  %s387_s15 = scalar_lea.vmem %s1218_s3, %s954_s25  ;;  %v616_v13 = vld [vmem:[%s1219_s4 + $0x10] sm:$0xff]  ;;  %v647_v16 = vld [vmem:[%s1220_s5 + $0x8] sm:$0xff] }
   0xf   : > { %v414_v2 = vld [vmem:[%s377_s28 + $0x10] sm:$0xff]  ;;  %v412_v3 = vld [vmem:[%s377_s28] sm:$0xff]  ;;  %v415_v4 = vld [vmem:[%s377_s28 + $0x18] sm:$0xff]  ;;  %v439_v27 = vshrl.u32 %v438_v24, 7  ;;  %s1183_s9 = scalar_lea.vmem %s1215_s0, %s953_s30  ;;  %s1190_s11 = scalar_lea.vmem %s1221_s6, %s953_s30 }
  0x10   : > { %429 = vperm.xlu1 %985, %v414_v2   ;;  %465 = vperm.xlu0 %986, %v412_v3   ;;  %v413_v5 = vld [vmem:[%s377_s28 + $0x8] sm:$0xff]  ;;  %v726_v12 = vld [vmem:[%s387_s15] sm:$0xff]  ;;  %v728_v14 = vld [vmem:[%s387_s15 + $0x10] sm:$0xff] }
  0x11   : > { %v649_v17 = vld [vmem:[%s1220_s5 + $0x18] sm:$0xff]  ;;  %v727_v18 = vld [vmem:[%s387_s15 + $0x8] sm:$0xff]  ;;  %v440_v30 = vsub.s32 0, %v439_v27  ;;  %v444_v31 = vsub.s32 4, %v439_v27  ;;  %v416_v32 = vld [vmem:[%s1217_s2] sm:$0xff]  ;;  %v482_v33 = vsub.s32 1, %v439_v27 }
  0x12   : > { %v729_v19 = vld [vmem:[%s387_s15 + $0x18] sm:$0xff]  ;;  %v486_v34 = vsub.s32 5, %v439_v27  ;;  %v532_v39 = vsub.s32 2, %v439_v27  ;;  %v536_v40 = vsub.s32 6, %v439_v27  ;;  %v582_v44 = vsub.s32 3, %v439_v27 }
  0x13   : > { %v441_v37 = vrot.slane %v416_v32, %v440_v30  ;;  %v445_v38 = vrot.slane %v416_v32, %v444_v31  ;;  %v483_v41 = vrot.slane %v416_v32, %v482_v33  ;;  %v586_v45 = vsub.s32 7, %v439_v27 }
  0x14   : > { %434 = vperm.xlu1 %985, %v415_v4   ;;  %477 = vperm.xlu0 %986, %v415_v4   ;;  %v487_v42 = vrot.slane %v416_v32, %v486_v34  ;;  %v533_v49 = vrot.slane %v416_v32, %v532_v39  ;;  %v537_v50 = vrot.slane %v416_v32, %v536_v40 }
  0x15   : > { %v451_v47 = vrot.slane %v441_v37, %v440_v30  ;;  %v455_v48 = vrot.slane %v445_v38, %v440_v30  ;;  %v493_v51 = vrot.slane %v483_v41, %v482_v33  ;;  %v583_v54 = vrot.slane %v416_v32, %v582_v44 }
  0x16   : > { %v497_v52 = vrot.slane %v487_v42, %v482_v33  ;;  %v587_v55 = vrot.slane %v416_v32, %v586_v45  ;;  %v543_v61 = vrot.slane %v533_v49, %v532_v39  ;;  %v547_v62 = vrot.slane %v537_v50, %v532_v39 }
  0x17   : > { %v1155_v63 = vrot.slane %v583_v54, %v582_v44 }
  0x18   : > { %987 = vset.pattern.permute.xlu1 %v1050_v0  ;;  %989 = vset.pattern.permute.xlu0 %v1052_v6  ;;  %v1157_v0 = vrot.slane %v587_v55, %v582_v44 }
  0x19   : > { %469 = vperm.xlu1 %987, %v413_v5   ;;  %519 = vperm.xlu0 %989, %v413_v5  }
  0x1d   : > { %473 = vperm.xlu1 %987, %v414_v2   ;;  %990 = vset.pattern.permute.xlu0 %v1053_v7 }
  0x1e   : > { %565 = vperm.xlu0 %990, %v412_v3  }
  0x21   : > { %988 = vset.pattern.permute.xlu1 %v1052_v6 }
  0x22   : > { %515 = vperm.xlu1 %988, %v412_v3   ;;  %577 = vperm.xlu0 %990, %v415_v4  }
  0x26   : > { %523 = vperm.xlu1 %988, %v414_v2   ;;  %992 = vset.pattern.permute.xlu0 %v1051_v1 }
  0x27   : > { %419 = vperm.xlu0 %992, %v412_v3  }
  0x2a   : > { %527 = vperm.xlu1 %988, %v415_v4  }
  0x2b   : > { %424 = vperm.xlu0 %992, %v413_v5  }
  0x2e   : > { %991 = vset.pattern.permute.xlu1 %v1053_v7 }
  0x2f   : > { %569 = vperm.xlu1 %991, %v413_v5   ;;  %625 = vperm.xlu0 %992, %v615_v8  }
  0x33   : > { %573 = vperm.xlu1 %991, %v414_v2   ;;  %652 = vperm.xlu0 %992, %v646_v9  }
  0x37   : > { %993 = vset.pattern.permute.xlu1 %v1051_v1  ;;  %662 = vperm.xlu0 %992, %v648_v10  }
  0x38   : > { %620 = vperm.xlu1 %993, %v614_v11  }
  0x3b   : > { %732 = vperm.xlu0 %992, %v726_v12  }
  0x3c   : > { %630 = vperm.xlu1 %993, %v616_v13  }
  0x3f   : > { %742 = vperm.xlu0 %992, %v728_v14  }
  0x40   : > { %635 = vperm.xlu1 %993, %v617_v15  }
  0x44   : > { %657 = vperm.xlu1 %993, %v647_v16  }
  0x48   : > { %667 = vperm.xlu1 %993, %v649_v17  }
  0x4c   : > { %737 = vperm.xlu1 %993, %v727_v18  }
  0x50   : > { %747 = vperm.xlu1 %993, %v729_v19  }
  0x8b   : > { %v430_v20 = vpop.permute.xlu1 %429  ;;  %v466_v21 = vpop.permute.xlu0 %465 }
  0x8c   : > { %v498_v59 = vmul.f32 %v493_v51, %v466_v21  ;;  %v499_v60 = vmul.f32 %v497_v52, %v466_v21  ;;  %v460_v16 = vmul.f32 %v451_v47, %v430_v20  ;;  %v461_v17 = vmul.f32 %v455_v48, %v430_v20 }
  0x8f   : > { %v1144_v22 = vpop.permute.xlu1 %434  ;;  %v1146_v23 = vpop.permute.xlu0 %477 }
  0x90   : > { %v462_v21 = vmul.f32 %v451_v47, %v1144_v22  ;;  %v463_v24 = vmul.f32 %v455_v48, %v1144_v22  ;;  %v504_v20 = vmul.f32 %v493_v51, %v1146_v23 }
  0x94   : > { %v470_v25 = vpop.permute.xlu1 %469  ;;  %v1148_v26 = vpop.permute.xlu0 %519 }
  0x95   : > { %v500_v18 = vmul.f32 %v493_v51, %v470_v25  ;;  %v501_v19 = vmul.f32 %v497_v52, %v470_v25  ;;  %v505_v25 = vmul.f32 %v497_v52, %v1146_v23  ;;  %v550_v38 = vmul.f32 %v543_v61, %v1148_v26 }
  0x96   : > { %v551_v22 = vmul.f32 %v547_v62, %v1148_v26 }
  0x98   : > { %v474_v28 = vpop.permute.xlu1 %473 }
  0x99   : > { %v566_v29 = vpop.permute.xlu0 %565  ;;  %v502_v6 = vmul.f32 %v493_v51, %v474_v28  ;;  %v503_v7 = vmul.f32 %v497_v52, %v474_v28 }
  0x9a   : > { %v598_v11 = vmul.f32 %v1155_v63, %v566_v29  ;;  %v599_v12 = vmul.f32 %v1157_v0, %v566_v29 }
  0x9b   : > { %v510_v30 = vadd.f32 %v502_v6, %v460_v16  ;;  %v511_v31 = vadd.f32 %v503_v7, %v461_v17 }
  0x9d   : > { %v516_v35 = vpop.permute.xlu1 %515  ;;  %v1153_v36 = vpop.permute.xlu0 %577 }
  0x9e   : > { %v548_v4 = vmul.f32 %v543_v61, %v516_v35  ;;  %v549_v5 = vmul.f32 %v547_v62, %v516_v35 }
  0xa1   : > { %v524_v43 = vpop.permute.xlu1 %523 }
  0xa2   : > { %v420_v46 = vpop.permute.xlu0 %419  ;;  %v552_v27 = vmul.f32 %v543_v61, %v524_v43  ;;  %v553_v28 = vmul.f32 %v547_v62, %v524_v43 }
  0xa3   : > { %v456_v56 = vmul.f32 %v451_v47, %v420_v46  ;;  %v457_v57 = vmul.f32 %v455_v48, %v420_v46 }
  0xa4   : > { %v560_v41 = vadd.f32 %v552_v27, %v510_v30  ;;  %v561_v42 = vadd.f32 %v553_v28, %v511_v31 }
  0xa5   : > { %v528_v53 = vpop.permute.xlu1 %527  ;;  %v506_v1 = vadd.f32 %v498_v59, %v456_v56  ;;  %v507_v2 = vadd.f32 %v499_v60, %v457_v57  ;;  %v512_v59 = vadd.f32 %v504_v20, %v462_v21  ;;  %v513_v60 = vadd.f32 %v505_v25, %v463_v24 }
  0xa6   : > { %v425_v58 = vpop.permute.xlu0 %424  ;;  %v554_v52 = vmul.f32 %v543_v61, %v528_v53  ;;  %v555_v54 = vmul.f32 %v547_v62, %v528_v53  ;;  %v605_v53 = vmul.f32 %v1157_v0, %v1153_v36 }
  0xa7   : > { %v458_v8 = vmul.f32 %v451_v47, %v425_v58  ;;  %v459_v9 = vmul.f32 %v455_v48, %v425_v58  ;;  %v556_v14 = vadd.f32 %v548_v4, %v506_v1  ;;  %v557_v15 = vadd.f32 %v549_v5, %v507_v2 }
  0xa8   : > { %v562_v61 = vadd.f32 %v554_v52, %v512_v59 }
  0xa9   : > { %v508_v32 = vadd.f32 %v500_v18, %v458_v8  ;;  %v509_v33 = vadd.f32 %v501_v19, %v459_v9  ;;  %v606_v35 = vadd.f32 %v598_v11, %v556_v14  ;;  %v607_v37 = vadd.f32 %v599_v12, %v557_v15 }
  0xaa   : > { %v570_v3 = vpop.permute.xlu1 %569  ;;  %v1159_v10 = vpop.permute.xlu0 %625  ;;  %v604_v8 = vmul.f32 %v1155_v63, %v1153_v36  ;;  %v563_v9 = vadd.f32 %v555_v54, %v513_v60  ;;  %v719_v54 = vld [vmem:[%s1183_s9 + $0x8] sm:$0xff]  ;;  %v722_v60 = vld [vmem:[%s1183_s9 + $0x20] sm:$0xff] }
  0xab   : > { %v600_v45 = vmul.f32 %v1155_v63, %v570_v3  ;;  %v601_v46 = vmul.f32 %v1157_v0, %v570_v3  ;;  %v558_v47 = vadd.f32 %v550_v38, %v508_v32  ;;  %v559_v48 = vadd.f32 %v551_v22, %v509_v33 }
  0xac   : > { %v612_v17 = vadd.f32 %v604_v8, %v562_v61 }
  0xad   : > { %v608_v1 = vadd.f32 %v600_v45, %v558_v47  ;;  %v609_v2 = vadd.f32 %v601_v46, %v559_v48 }
  0xae   : > { %v574_v13 = vpop.permute.xlu1 %573  ;;  %v653_v39 = vpop.permute.xlu0 %652 }
  0xaf   : > { %v602_v34 = vmul.f32 %v1155_v63, %v574_v13  ;;  %v603_v29 = vmul.f32 %v1157_v0, %v574_v13  ;;  %v640_v13 = vmul.f32 %v1159_v10, %v608_v1  ;;  %v641_v14 = vmul.f32 %v1159_v10, %v609_v2  ;;  %v723_v2 = vld [vmem:[%s1183_s9 + $0x28] sm:$0xff] }
  0xb0   : > { %v613_v63 = vadd.f32 %v605_v53, %v563_v9  ;;  %v720_v53 = vld [vmem:[%s1183_s9 + $0x10] sm:$0xff] }
  0xb1   : > { %v610_v51 = vadd.f32 %v602_v34, %v560_v41  ;;  %v611_v23 = vadd.f32 %v603_v29, %v561_v42 }
  0xb2   : > { %v663_v4 = vpop.permute.xlu0 %662 }
  0xb3   : > { %v621_v40 = vpop.permute.xlu1 %620 }
  0xb4   : > { %v638_v43 = vmul.f32 %v621_v40, %v606_v35  ;;  %v639_v44 = vmul.f32 %v621_v40, %v607_v37 }
  0xb6   : > { %v670_v49 = vadd.f32 %v653_v39, %v638_v43  ;;  %v671_v50 = vadd.f32 %v653_v39, %v639_v44  ;;  %v733_v47 = vpop.permute.xlu0 %732 }
  0xb7   : > { %v631_v55 = vpop.permute.xlu1 %630 }
  0xb8   : > { %v678_v26 = vsub.f32 0.0, %v670_v49  ;;  %v679_v56 = vsub.f32 0.0, %v671_v50  ;;  %v642_v57 = vmul.f32 %v631_v55, %v610_v51  ;;  %v643_v58 = vmul.f32 %v631_v55, %v611_v23  ;;  %v718_v51 = vld [vmem:[%s1183_s9] sm:$0xff] }
  0xba   : > { %v686_v5 = vmul.f32 1.442695, %v678_v26  ;;  %v688_v3 = vmul.f32 1.442695, %v679_v56  ;;  %v674_v6 = vadd.f32 %v663_v4, %v642_v57  ;;  %v675_v7 = vadd.f32 %v663_v4, %v643_v58  ;;  %v743_v59 = vpop.permute.xlu0 %742 }
  0xbb   : > { %v636_v62 = vpop.permute.xlu1 %635 }
  0xbc   : > { %994 = vpow2.f32 %v686_v5  ;;  %v682_v11 = vsub.f32 0.0, %v674_v6  ;;  %v683_v12 = vsub.f32 0.0, %v675_v7  ;;  %v644_v36 = vmul.f32 %v636_v62, %v612_v17 }
  0xbd   : > { %996 = vpow2.f32 %v688_v3  ;;  %v645_v0 = vmul.f32 %v636_v62, %v613_v63  ;;  %v721_v62 = vld [vmem:[%s1183_s9 + $0x18] sm:$0xff] }
  0xbe   : > { %v694_v15 = vmul.f32 1.442695, %v682_v11  ;;  %v696_v16 = vmul.f32 1.442695, %v683_v12 }
  0xbf   : > { %v658_v18 = vpop.permute.xlu1 %657 }
  0xc0   : > { %998 = vpow2.f32 %v694_v15  ;;  %v672_v19 = vadd.f32 %v658_v18, %v640_v13  ;;  %v673_v21 = vadd.f32 %v658_v18, %v641_v14  ;;  %v725_v18 = vld [vmem:[%s1183_s9 + $0x38] sm:$0xff] }
  0xc1   : > { %1000 = vpow2.f32 %v696_v16  ;;  %v724_v16 = vld [vmem:[%s1183_s9 + $0x30] sm:$0xff] }
  0xc2   : > { %v680_v24 = vsub.f32 0.0, %v672_v19  ;;  %v681_v27 = vsub.f32 0.0, %v673_v21 }
  0xc3   : > { %v668_v28 = vpop.permute.xlu1 %667 }
  0xc4   : > { %v690_v30 = vmul.f32 1.442695, %v680_v24  ;;  %v692_v31 = vmul.f32 1.442695, %v681_v27  ;;  %v676_v32 = vadd.f32 %v668_v28, %v644_v36  ;;  %v677_v33 = vadd.f32 %v668_v28, %v645_v0 }
  0xc6   : > { %1002 = vpow2.f32 %v690_v30  ;;  %v684_v10 = vsub.f32 0.0, %v676_v32  ;;  %v685_v34 = vsub.f32 0.0, %v677_v33 }
  0xc7   : > { %1004 = vpow2.f32 %v692_v31  ;;  %v738_v7 = vpop.permute.xlu1 %737 }
  0xc8   : > { %v698_v29 = vmul.f32 1.442695, %v684_v10  ;;  %v700_v35 = vmul.f32 1.442695, %v685_v34 }
  0xc9   : > { %v995_v37 = vpop.eup %994 }
  0xca   : > { %v997_v20 = vpop.eup %996  ;;  %v702_v25 = vadd.f32 1.0, %v995_v37  ;;  %1006 = vpow2.f32 %v698_v29 }
  0xcb   : > { %v703_v38 = vadd.f32 1.0, %v997_v20  ;;  %1008 = vpow2.f32 %v700_v35  ;;  %v748_v15 = vpop.permute.xlu1 %747 }
  0xcc   : > { %1010 = vrcp.f32 %v702_v25 }
  0xcd   : > { %v999_v22 = vpop.eup %998  ;;  %1012 = vrcp.f32 %v703_v38 }
  0xce   : > { %v1001_v39 = vpop.eup %1000  ;;  %v706_v40 = vadd.f32 1.0, %v999_v22 }
  0xcf   : > { %v707_v41 = vadd.f32 1.0, %v1001_v39 }
  0xd0   : > { %1014 = vrcp.f32 %v706_v40 }
  0xd1   : > { %1016 = vrcp.f32 %v707_v41 }
  0xd3   : > { %v1003_v42 = vpop.eup %1002 }
  0xd4   : > { %v1005_v43 = vpop.eup %1004  ;;  %v704_v44 = vadd.f32 1.0, %v1003_v42 }
  0xd5   : > { %v705_v45 = vadd.f32 1.0, %v1005_v43 }
  0xd6   : > { %1018 = vrcp.f32 %v704_v44 }
  0xd7   : > { %v1007_v46 = vpop.eup %1006  ;;  %1020 = vrcp.f32 %v705_v45 }
  0xd8   : > { %v1009_v48 = vpop.eup %1008  ;;  %v708_v49 = vadd.f32 1.0, %v1007_v46 }
  0xd9   : > { %v1011_v50 = vpop.eup %1010  ;;  %v709_v23 = vadd.f32 1.0, %v1009_v48 }
  0xda   : > { %v1013_v52 = vpop.eup %1012  ;;  %v750_v55 = vadd.f32 %v1011_v50, %v733_v47  ;;  %1022 = vrcp.f32 %v708_v49 }
  0xdb   : > { %v751_v26 = vadd.f32 %v1013_v52, %v733_v47  ;;  %1024 = vrcp.f32 %v709_v23 }
  0xdc   : > { %v758_v56 = vmul.f32 %v750_v55, %v718_v51 }
  0xdd   : > { %v1015_v57 = vpop.eup %1014  ;;  %v759_v58 = vmul.f32 %v751_v26, %v719_v54 }
  0xde   : > { %v1017_v1 = vpop.eup %1016  ;;  %766 = vst [vmem:[%s1190_s11] sm:$0xff] %v758_v56  ;;  %v754_v4 = vadd.f32 %v1015_v57, %v743_v59 }
  0xdf   : > { %767 = vst [vmem:[%s1190_s11 + $0x8] sm:$0xff] %v759_v58  ;;  %v755_v5 = vadd.f32 %v1017_v1, %v743_v59 }
  0xe0   : > { %v762_v3 = vmul.f32 %v754_v4, %v722_v60 }
  0xe1   : > { %v763_v6 = vmul.f32 %v755_v5, %v723_v2 }
  0xe2   : > { %770 = vst [vmem:[%s1190_s11 + $0x20] sm:$0xff] %v762_v3 }
  0xe3   : > { %v1019_v8 = vpop.eup %1018  ;;  %771 = vst [vmem:[%s1190_s11 + $0x28] sm:$0xff] %v763_v6 }
  0xe4   : > { %v1021_v61 = vpop.eup %1020  ;;  %v752_v9 = vadd.f32 %v1019_v8, %v738_v7 }
  0xe5   : > { %v753_v11 = vadd.f32 %v1021_v61, %v738_v7 }
  0xe6   : > { %v760_v12 = vmul.f32 %v752_v9, %v720_v53 }
  0xe7   : > { %v1023_v13 = vpop.eup %1022  ;;  %v761_v14 = vmul.f32 %v753_v11, %v721_v62 }
  0xe8   : > { %v1025_v17 = vpop.eup %1024  ;;  %768 = vst [vmem:[%s1190_s11 + $0x10] sm:$0xff] %v760_v12  ;;  %v756_v63 = vadd.f32 %v1023_v13, %v748_v15 }
  0xe9   : > { %769 = vst [vmem:[%s1190_s11 + $0x18] sm:$0xff] %v761_v14  ;;  %v757_v19 = vadd.f32 %v1025_v17, %v748_v15 }
  0xea   : > { %v764_v21 = vmul.f32 %v756_v63, %v724_v16 }
  0xeb   : > { %v765_v36 = vmul.f32 %v757_v19, %v725_v18 }
  0xec   : > { %772 = vst [vmem:[%s1190_s11 + $0x30] sm:$0xff] %v764_v21 }
  0xed   : > { %773 = vst [vmem:[%s1190_s11 + $0x38] sm:$0xff] %v765_v36 }
  0xee PF: > { %s16_s23 = sadd.s32 1, %s1048_s23   ;;  %s1222_s21 = smov %s1044_s22 }
  0xef   : > { %p13_p5 = scmp.ge.s32.totalorder %s16_s23, 4   ;;  %s1223_s22 = smov %s1225_s24 }
  0xf1   :  { %15 = sbr.rel (!%p13_p5) target bundleno = 2 (0x2), region = 86 }

</bundles_post_ra>
